<compile_context>
chip_gen: v5e
topology: v5e:2x2
jax: 0.10.0
libtpu: 0.0.40
codegen_flags: <defaults>
</compile_context>

<pallas_src>
import jax
import jax.numpy as jnp
from jax.experimental import pallas as pl
from jax.experimental.pallas import tpu as pltpu


def _round_up(x, m):
    return (x + m - 1) // m * m


# Full-f32 MXU passes so the kernel matches the f32 reference bit-closely.
_MXU_PRECISION = jax.lax.Precision.HIGHEST


# ----------------------------------------------------------------------------
# Kernels
# ----------------------------------------------------------------------------
def _gated_kernel_single_k(x_ref, w_ref, b_ref, o_ref):
    """K fits one tile: no scratch, everything stays in registers.

    x_ref: (tm, K_pad)      activation tile
    w_ref: (K_pad, 2*tn)    fused weight tile [W1_tile | W2_tile]
    b_ref: (1, 2*tn)        fused bias tile   [b1_tile | b2_tile]
    o_ref: (tm, tn)         output tile
    """
    tn = o_ref.shape[-1]
    z = jnp.dot(
        x_ref[...], w_ref[...],
        preferred_element_type=jnp.float32,
        precision=_MXU_PRECISION,
    ) + b_ref[...]
    o_ref[...] = (z[:, :tn] * jax.nn.sigmoid(z[:, tn:])).astype(o_ref.dtype)


def _gated_kernel_multi_k(x_ref, w_ref, b_ref, o_ref, acc_ref):
    """K reduction over >=2 tiles; f32 accumulator resident across K.

    k==0 writes the dot directly (no zero-fill + +=); k==last folds the final
    dot, bias, sigmoid and multiply in registers without re-storing to acc.
    """
    k = pl.program_id(2)
    k_last = pl.num_programs(2) - 1

    d = jnp.dot(
        x_ref[...], w_ref[...],
        preferred_element_type=jnp.float32,
        precision=_MXU_PRECISION,
    )

    @pl.when(k == 0)
    def _first():
        acc_ref[...] = d

    @pl.when(jnp.logical_and(k > 0, k < k_last))
    def _middle():
        acc_ref[...] += d

    @pl.when(k == k_last)
    def _finalize():
        tn = o_ref.shape[-1]
        z = acc_ref[...] + d + b_ref[...]          # bias added exactly once
        o_ref[...] = (z[:, :tn] * jax.nn.sigmoid(z[:, tn:])).astype(o_ref.dtype)


# ----------------------------------------------------------------------------
# Tile selection
# ----------------------------------------------------------------------------
def _choose_k_tile(K):
    """Returns (tk, K_pad); tk <= 512, multiple of 128, dividing K_pad."""
    K128 = _round_up(K, 128)
    if K128 <= 512:
        return K128, K128
    for cand in (512, 384, 256, 128):              # prefer exact divisors
        if K128 % cand == 0:
            return cand, K128
    tk = 512
    return tk, _round_up(K128, tk)


def _choose_n_tile(N):
    """Returns (tn, N_pad). tn is lane-dense (multiple of 128), capped at 512.

    v7x has 2 TensorCores per chip: if N would collapse to one parallel tile,
    shrink tn (keeping a multiple of 128) so both cores get work. Harmless on
    v5e/v6e (same weight stream, slightly more grid steps).
    """
    tn = min(_round_up(N, 128), 512)
    if (N + tn - 1) // tn < 2 and tn > 128:
        tn = max(128, (tn // 2) // 128 * 128)
    return tn, _round_up(N, tn)


# ----------------------------------------------------------------------------
# Parameter-load-time fusion + jitted apply
# ----------------------------------------------------------------------------
def make_gated_layer(w1, b1, w2, b2, *, param_dtype=jnp.float32):
    """Fuse/pads the two linears ONCE; returns a jitted apply(x).

    Args:
      w1, w2: (in_dim, out_dim) weights (pre-transposed vs. nn.Linear).
      b1, b2: (out_dim,) biases.
      param_dtype: weight/activation dtype fed to the MXU. jnp.bfloat16 gives
        ~2x HBM bandwidth and native-rate MXU on v6e/v7x but relaxes accuracy.
    Returns:
      apply(x): (B, in_dim) -> (B, out_dim), f32.
    """
    K, N = w1.shape
    assert w2.shape == (K, N) and b1.shape == (N,) and b2.shape == (N,)
    param_dtype = jnp.dtype(param_dtype)

    tk, K_pad = _choose_k_tile(K)
    tn, N_pad = _choose_n_tile(N)
    n_n = N_pad // tn
    nk = K_pad // tk

    # One-time layout plumbing (parameter-load time, NOT per forward call):
    # zero-pad to tile multiples and interleave per output tile.
    w1_p = jnp.pad(w1.astype(jnp.float32), ((0, K_pad - K), (0, N_pad - N)))
    w2_p = jnp.pad(w2.astype(jnp.float32), ((0, K_pad - K), (0, N_pad - N)))
    b1_p = jnp.pad(b1.astype(jnp.float32), (0, N_pad - N))
    b2_p = jnp.pad(b2.astype(jnp.float32), (0, N_pad - N))
    wf = jnp.concatenate(
        [w1_p.reshape(K_pad, n_n, tn), w2_p.reshape(K_pad, n_n, tn)], axis=2
    ).reshape(K_pad, 2 * N_pad).astype(param_dtype)
    bf = jnp.concatenate(                           # bias stays f32 (added post-acc)
        [b1_p.reshape(1, n_n, tn), b2_p.reshape(1, n_n, tn)], axis=2
    ).reshape(1, 2 * N_pad)

    @jax.jit
    def apply(x):
        B = x.shape[0]
        assert x.shape == (B, K), x.shape

        # tm: multiple of 8, capped at 256 (keeps x/out/acc VMEM small; with
        # one or two M tiles the weight stream stays on the read roofline).
        tm = min(_round_up(B, 8), 256)
        B_pad = _round_up(B, tm)

        x_in = x if param_dtype == jnp.dtype(jnp.float32) else x.astype(param_dtype)
        x_p = jnp.pad(x_in, ((0, B_pad - B), (0, K_pad - K)))

        out_shape = jax.ShapeDtypeStruct((B_pad, N_pad), jnp.float32)
        cp2 = pltpu.CompilerParams(dimension_semantics=("parallel", "parallel"))
        cp3 = pltpu.CompilerParams(
            dimension_semantics=("parallel", "parallel", "arbitrary"))

        if nk == 1:
            out = pl.pallas_call(
                _gated_kernel_single_k,
                out_shape=out_shape,
                grid=(B_pad // tm, n_n),
                in_specs=[
                    pl.BlockSpec((tm, K_pad), lambda i, j: (i, 0)),
                    pl.BlockSpec((K_pad, 2 * tn), lambda i, j: (0, j)),
                    pl.BlockSpec((1, 2 * tn), lambda i, j: (0, j)),
                ],
                out_specs=pl.BlockSpec((tm, tn), lambda i, j: (i, j)),
                compiler_params=cp2,
            )(x_p, wf, bf)
        else:
            out = pl.pallas_call(
                _gated_kernel_multi_k,
                out_shape=out_shape,
                grid=(B_pad // tm, n_n, nk),
                in_specs=[
                    pl.BlockSpec((tm, tk), lambda i, j, k: (i, k)),
                    pl.BlockSpec((tk, 2 * tn), lambda i, j, k: (k, j)),
                    # Same block index across K -> bias DMA'd once per tile.
                    pl.BlockSpec((1, 2 * tn), lambda i, j, k: (0, j)),
                ],
                out_specs=pl.BlockSpec((tm, tn), lambda i, j, k: (i, j)),
                scratch_shapes=[pltpu.VMEM((tm, 2 * tn), jnp.float32)],
                compiler_params=cp3,
            )(x_p, wf, bf)

        return out[:B, :N]

    return apply


def gated_layer_ref(x, w1, b1, w2, b2):
    return (x @ w1 + b1) * jax.nn.sigmoid(x @ w2 + b2)


# ----------------------------------------------------------------------------
# Self-test
# ----------------------------------------------------------------------------
if __name__ == "__main__":
    def _uniform(key, shape, bound):
        return jax.random.uniform(key, shape, jnp.float32, -bound, bound)

    # --- test 1: tiny shapes (single-K path) --------------------------------
    key = jax.random.PRNGKey(0)
    B, in_dim, out_dim = 8, 32, 64
    k_x, k_w1, k_b1, k_w2, k_b2 = jax.random.split(key, 5)
    bound = 1.0 / (in_dim ** 0.5)   # nn.Linear-style init
    x = jax.random.normal(k_x, (B, in_dim), dtype=jnp.float32)
    w1 = _uniform(k_w1, (in_dim, out_dim), bound)
    b1 = _uniform(k_b1, (out_dim,), bound)
    w2 = _uniform(k_w2, (in_dim, out_dim), bound)
    b2 = _uniform(k_b2, (out_dim,), bound)

    layer = make_gated_layer(w1, b1, w2, b2)        # fuse weights once
    out = jax.block_until_ready(layer(x))
    ref = gated_layer_ref(x, w1, b1, w2, b2)
    assert out.shape == (B, out_dim), out.shape
    assert jnp.allclose(out, ref, atol=1e-4, rtol=1e-4), float(
        jnp.max(jnp.abs(out - ref)))

    # --- test 2: non-multiple shapes (padding path) --------------------------
    B2, in2, out2 = 10, 48, 96
    k2 = jax.random.split(jax.random.PRNGKey(1), 5)
    x2 = jax.random.normal(k2[0], (B2, in2), dtype=jnp.float32)
    w1b = jax.random.normal(k2[1], (in2, out2), dtype=jnp.float32) * 0.1
    b1b = jax.random.normal(k2[2], (out2,), dtype=jnp.float32) * 0.1
    w2b = jax.random.normal(k2[3], (in2, out2), dtype=jnp.float32) * 0.1
    b2b = jax.random.normal(k2[4], (out2,), dtype=jnp.float32) * 0.1
    layer2 = make_gated_layer(w1b, b1b, w2b, b2b)
    out2_k = jax.block_until_ready(layer2(x2))
    ref2 = gated_layer_ref(x2, w1b, b1b, w2b, b2b)
    assert out2_k.shape == (B2, out2), out2_k.shape
    assert jnp.allclose(out2_k, ref2, atol=1e-4, rtol=1e-4), float(
        jnp.max(jnp.abs(out2_k - ref2)))

    # --- test 3: K > 512 (multi-K accumulator path, 2 N tiles) ---------------
    B3, in3, out3 = 8, 1024, 256
    k3 = jax.random.split(jax.random.PRNGKey(2), 5)
    bound3 = 1.0 / (in3 ** 0.5)
    x3 = jax.random.normal(k3[0], (B3, in3), dtype=jnp.float32)
    w1c = _uniform(k3[1], (in3, out3), bound3)
    b1c = _uniform(k3[2], (out3,), bound3)
    w2c = _uniform(k3[3], (in3, out3), bound3)
    b2c = _uniform(k3[4], (out3,), bound3)
    layer3 = make_gated_layer(w1c, b1c, w2c, b2c)
    out3_k = jax.block_until_ready(layer3(x3))
    ref3 = gated_layer_ref(x3, w1c, b1c, w2c, b2c)
    assert out3_k.shape == (B3, out3), out3_k.shape
    assert jnp.allclose(out3_k, ref3, atol=1e-4, rtol=1e-4), float(
        jnp.max(jnp.abs(out3_k - ref3)))

    print("KERNEL_OK")
</pallas_src>

<mosaic_0001>
module attributes {stable_mosaic.version = 11 : i64} {
  func.func @_gated_kernel_single_k(%arg0: i32, %arg1: i32, %arg2: memref<8x128xf32, #tpu.memory_space<vmem>>, %arg3: memref<128x256xf32, #tpu.memory_space<vmem>>, %arg4: memref<1x256xf32, #tpu.memory_space<vmem>>, %arg5: memref<8x128xf32, #tpu.memory_space<vmem>>) attributes {dimension_semantics = [#tpu.dimension_semantics<parallel>, #tpu.dimension_semantics<parallel>], iteration_bounds = array<i64: 1, 1>, scalar_prefetch = 0 : i64, scratch_operands = 0 : i64, tpu.core_type = #tpu.core_type<tc>, window_params = [{transform_indices = @transform_0, window_bounds = array<i64: 8, 128>}, {transform_indices = @transform_1, window_bounds = array<i64: 128, 256>}, {transform_indices = @transform_2, window_bounds = array<i64: 1, 256>}, {transform_indices = @transform_3, window_bounds = array<i64: 8, 128>}]} {
    %c0 = arith.constant 0 : index
    %c0_0 = arith.constant 0 : index
    %0 = vector.load %arg2[%c0, %c0_0] : memref<8x128xf32, #tpu.memory_space<vmem>>, vector<8x128xf32>
    %c0_1 = arith.constant 0 : index
    %c0_2 = arith.constant 0 : index
    %1 = vector.load %arg3[%c0_1, %c0_2] : memref<128x256xf32, #tpu.memory_space<vmem>>, vector<128x256xf32>
    %cst = arith.constant dense<0.000000e+00> : vector<8x256xf32>
    %2 = tpu.matmul %0, %1, %cst {dimension_numbers = #tpu.dot_dimension_numbers<[1], [0], [0], [1], [0, 0, 1, 1], [], []>, precision = #tpu.contract_precision<fp32>} : vector<8x128xf32>, vector<128x256xf32>, vector<8x256xf32> -> vector<8x256xf32>
    %c0_3 = arith.constant 0 : index
    %c0_4 = arith.constant 0 : index
    %3 = vector.load %arg4[%c0_3, %c0_4] : memref<1x256xf32, #tpu.memory_space<vmem>>, vector<1x256xf32>
    %4 = vector.broadcast %3 : vector<1x256xf32> to vector<8x256xf32>
    %5 = arith.addf %2, %4 : vector<8x256xf32>
    %6 = vector.extract_strided_slice %5 {offsets = [0, 0], sizes = [8, 128], strides = [1, 1]} : vector<8x256xf32> to vector<8x128xf32>
    %7 = vector.extract_strided_slice %5 {offsets = [0, 128], sizes = [8, 128], strides = [1, 1]} : vector<8x256xf32> to vector<8x128xf32>
    %8 = arith.negf %7 : vector<8x128xf32>
    %9 = math.exp %8 : vector<8x128xf32>
    %cst_5 = arith.constant 1.000000e+00 : f32
    %10 = vector.broadcast %cst_5 : f32 to vector<8x128xf32>
    %11 = arith.addf %10, %9 : vector<8x128xf32>
    %12 = arith.divf %10, %11 : vector<8x128xf32>
    %13 = arith.mulf %6, %12 : vector<8x128xf32>
    %c0_6 = arith.constant 0 : index
    %c0_7 = arith.constant 0 : index
    %14 = vector.load %arg5[%c0_6, %c0_7] : memref<8x128xf32, #tpu.memory_space<vmem>>, vector<8x128xf32>
    tpu.vector_store %arg5[%c0_6, %c0_7], %13 {strides = array<i32>} : memref<8x128xf32, #tpu.memory_space<vmem>>, vector<8x128xf32>,
    return
  }
  func.func @transform_0(%arg0: i32, %arg1: i32) -> (i32, i32) {
    %c0_i32 = arith.constant 0 : i32
    %c0_i32_0 = arith.constant 0 : i32
    return %arg0, %c0_i32 : i32, i32
  }
  func.func @transform_1(%arg0: i32, %arg1: i32) -> (i32, i32) {
    %c0_i32 = arith.constant 0 : i32
    %c0_i32_0 = arith.constant 0 : i32
    return %c0_i32, %arg1 : i32, i32
  }
  func.func @transform_2(%arg0: i32, %arg1: i32) -> (i32, i32) {
    %c0_i32 = arith.constant 0 : i32
    %c0_i32_0 = arith.constant 0 : i32
    return %c0_i32, %arg1 : i32, i32
  }
  func.func @transform_3(%arg0: i32, %arg1: i32) -> (i32, i32) {
    %c0_i32 = arith.constant 0 : i32
    return %arg0, %arg1 : i32, i32
  }
}

</mosaic_0001>

<bundles_post_ra>
// kernel: apply.1
= control target key start
LH: loop header
LB: loop body
LE: loop exit
PB: predicated region body
PF: predicated region fallthrough
CT: control target
= control target key end

     0   :  { %8 = vsyncpa [#allocation3], 0  ;;  %s1387_s0 = inlined_call_operand.vmem [shape: f32[8,128], index: 0, kind: input, shape index: {}]   ;;  %s1388_s1 = inlined_call_operand.hbm [shape: f32[128,256], index: 1, kind: input, shape index: {}]   ;;  %s1389_s2 = inlined_call_operand.vmem [shape: f32[1,256], index: 2, kind: input, shape index: {}]   ;;  %s1390_s3 = inlined_call_operand.hbm [shape: f32[8,128], index: 3, kind: output, shape index: {}]  }
   0x1   :  { %9 = vsyncpa [#allocation4], 0  ;;  %s16_s14 = sshll.u32 %s1388_s1, 4  ;;  %s851_s15 = smov [#allocation2]   ;;  %s17_s14 = int_to_ptr.hbm [resolvable:$true] %s16_s14 }
   0x2   :  { %s18_s16 = sshll.u32 %s851_s15, 4  ;;  %s852_s17 = smov 256   ;;  %s19_s16 = int_to_ptr.vmem [resolvable:$true] %s18_s16 }
   0x3   :  { %s853_s18 = smov 16  }
   0x4   :  { %24 = dma.hbm_to_vmem [thread:$0]  %s17_s14, 4096, %s19_s16, [#allocation3], %s852_s17, %s852_s17, %s853_s18  }
   0x5   :  { %847 = dma.done.wait [#allocation3], 4096  }
   0x6   :  { %848 = vsyncadd [#allocation3], 4294963200  ;;  %v62_v0 = vld [vmem:[#allocation2 + $0xf0] sm:$0xff]  ;;  %v60_v1 = vld [vmem:[#allocation2 + $0xe0] sm:$0xff]  ;;  %s780_s24 = sshll.u32 %s1390_s3, 4  ;;  %s781_s24 = int_to_ptr.hbm [resolvable:$true] %s780_s24 }
   0x7   :  { %v58_v2 = vld [vmem:[#allocation2 + $0xd0] sm:$0xff]  ;;  %v878_v3 = vand.u32 4294901760, %v62_v0  ;;  %v880_v4 = vand.u32 4294901760, %v60_v1  ;;  %v56_v6 = vld [vmem:[#allocation2 + $0xc0] sm:$0xff]  ;;  %v63_v60 = vld [vmem:[#allocation2 + $0xf8] sm:$0xff] }
   0x8   :  { %v882_v5 = vand.u32 4294901760, %v58_v2  ;;  %v54_v7 = vld [vmem:[#allocation2 + $0xb0] sm:$0xff]  ;;  %v52_v8 = vld [vmem:[#allocation2 + $0xa0] sm:$0xff]  ;;  %v884_v9 = vand.u32 4294901760, %v56_v6  ;;  %v61_v63 = vld [vmem:[#allocation2 + $0xe8] sm:$0xff] }
   0x9   :  { %v886_v10 = vand.u32 4294901760, %v54_v7  ;;  %v888_v11 = vand.u32 4294901760, %v52_v8  ;;  %v50_v12 = vld [vmem:[#allocation2 + $0x90] sm:$0xff]  ;;  %v48_v13 = vld [vmem:[#allocation2 + $0x80] sm:$0xff]  ;;  %v891_v14 = vsub.f32 %v62_v0, %v878_v3  ;;  %71 = vmatpush.msra.mxu0 %v878_v3  ;;  %v895_v15 = vsub.f32 %v60_v1, %v880_v4  ;;  %267 = vmatpush.msra.mxu3 %v878_v3 }
   0xa   :  { %v899_v16 = vsub.f32 %v58_v2, %v882_v5  ;;  %v901_v17 = vand.u32 4294901760, %v50_v12  ;;  %v904_v18 = vsub.f32 %v56_v6, %v884_v9  ;;  %v917_v24 = vand.u32 4294901760, %v48_v13  ;;  %v46_v25 = vld [vmem:[#allocation2 + $0x70] sm:$0xff]  ;;  %v44_v34 = vld [vmem:[#allocation2 + $0x60] sm:$0xff] }
   0xb   :  { %v907_v19 = vsub.f32 %v54_v7, %v886_v10  ;;  %v910_v20 = vsub.f32 %v52_v8, %v888_v11  ;;  %214 = vmatpush.msra.mxu2 %v891_v14  ;;  %73 = vmatpush.msra.mxu0 %v880_v4  ;;  %v1405_v21 = vand.u32 4294901760, %v891_v14  ;;  %v1404_v22 = vand.u32 4294901760, %v895_v15  ;;  %v42_v35 = vld [vmem:[#allocation2 + $0x50] sm:$0xff]  ;;  %v40_v40 = vld [vmem:[#allocation2 + $0x40] sm:$0xff] }
   0xc   :  { %v1403_v23 = vand.u32 4294901760, %v899_v16  ;;  %269 = vmatpush.msra.mxu3 %v880_v4  ;;  %v1400_v26 = vand.u32 4294901760, %v904_v18  ;;  %v922_v27 = vsub.f32 %v50_v12, %v901_v17  ;;  %v938_v33 = vand.u32 4294901760, %v46_v25  ;;  %v38_v48 = vld [vmem:[#allocation2 + $0x30] sm:$0xff]  ;;  %v36_v53 = vld [vmem:[#allocation2 + $0x20] sm:$0xff] }
   0xd   :  { %217 = vmatpush.msra.mxu2 %v895_v15  ;;  %v114_v28 = vsub.f32 %v891_v14, %v1405_v21  ;;  %75 = vmatpush.msra.mxu0 %v882_v5  ;;  %v120_v29 = vsub.f32 %v895_v15, %v1404_v22  ;;  %v1399_v31 = vand.u32 4294901760, %v907_v19  ;;  %v1397_v32 = vand.u32 4294901760, %v910_v20  ;;  %v34_v59 = vld [vmem:[#allocation2 + $0x10] sm:$0xff]  ;;  %v32_v6 = vld [vmem:[#allocation2] sm:$0xff] }
   0xe   :  { %v126_v30 = vsub.f32 %v899_v16, %v1403_v23  ;;  %271 = vmatpush.msra.mxu3 %v882_v5  ;;  %v132_v38 = vsub.f32 %v904_v18, %v1400_v26  ;;  %v946_v39 = vsub.f32 %v48_v13, %v917_v24  ;;  %v1396_v41 = vand.u32 4294901760, %v922_v27  ;;  %v59_v13 = vld [vmem:[#allocation2 + $0xd8] sm:$0xff] }
   0xf   :  { %v115_v36 = vand.u32 4294901760, %v114_v28  ;;  %220 = vmatpush.msra.mxu2 %v899_v16  ;;  %v121_v37 = vand.u32 4294901760, %v120_v29  ;;  %77 = vmatpush.msra.mxu0 %v884_v9  ;;  %v951_v42 = vsub.f32 %v46_v25, %v938_v33  ;;  %v138_v44 = vsub.f32 %v907_v19, %v1399_v31  ;;  %v47_v26 = vld [vmem:[#allocation2 + $0x78] sm:$0xff] }
  0x10   :  { %273 = vmatpush.msra.mxu3 %v884_v9  ;;  %v127_v43 = vand.u32 4294901760, %v126_v30  ;;  %v957_v45 = vand.u32 4294901760, %v44_v34  ;;  %v959_v46 = vand.u32 4294901760, %v42_v35  ;;  %v963_v47 = vand.u32 4294901760, %v40_v40 }
  0x11   :  { %116 = vmatpush.msra.mxu1 %v115_v36  ;;  %223 = vmatpush.msra.mxu2 %v904_v18  ;;  %v133_v49 = vand.u32 4294901760, %v132_v38  ;;  %v144_v50 = vsub.f32 %v910_v20, %v1397_v32  ;;  %v1395_v51 = vand.u32 4294901760, %v946_v39  ;;  %v1394_v54 = vand.u32 4294901760, %v951_v42  ;;  %v49_v32 = vld [vmem:[#allocation2 + $0x88] sm:$0xff] }
  0x12   :  { %79 = vmatpush.msra.mxu0 %v886_v10  ;;  %275 = vmatpush.msra.mxu3 %v886_v10  ;;  %v971_v52 = vsub.f32 %v44_v34, %v957_v45  ;;  %v139_v55 = vand.u32 4294901760, %v138_v44  ;;  %v150_v56 = vsub.f32 %v922_v27, %v1396_v41  ;;  %v981_v57 = vsub.f32 %v42_v35, %v959_v46 }
  0x13   :  { %122 = vmatpush.msra.mxu1 %v121_v37  ;;  %226 = vmatpush.msra.mxu2 %v907_v19  ;;  %v983_v58 = vand.u32 4294901760, %v38_v48  ;;  %v988_v61 = vsub.f32 %v40_v40, %v963_v47  ;;  %v990_v62 = vand.u32 4294901760, %v36_v53  ;;  %v145_v0 = vand.u32 4294901760, %v144_v50  ;;  %v57_v37 = vld [vmem:[#allocation2 + $0xc8] sm:$0xff]  ;;  %v55_v50 = vld [vmem:[#allocation2 + $0xb8] sm:$0xff] }
  0x14   :  { %81 = vmatpush.msra.mxu0 %v888_v11  ;;  %277 = vmatpush.msra.mxu3 %v888_v11  ;;  %v156_v1 = vsub.f32 %v946_v39, %v1395_v51  ;;  %v1392_v2 = vand.u32 4294901760, %v971_v52  ;;  %v162_v7 = vsub.f32 %v951_v42, %v1394_v54  ;;  %v1002_v8 = vand.u32 4294901760, %v34_v59 }
  0x15   :  { %128 = vmatpush.msra.mxu1 %v127_v43  ;;  %229 = vmatpush.msra.mxu2 %v910_v20  ;;  %v1004_v12 = vand.u32 4294901760, %v63_v60  ;;  %v151_v25 = vand.u32 4294901760, %v150_v56  ;;  %v1391_v28 = vand.u32 4294901760, %v981_v57  ;;  %v1009_v29 = vsub.f32 %v38_v48, %v983_v58 }
  0x16   :  { %83 = vmatpush.msra.mxu0 %v901_v17  ;;  %279 = vmatpush.msra.mxu3 %v901_v17  ;;  %1422 = vst [vmem:[#allocation8_spill] sm:$0xff] %v1002_v8  ;;  %v1011_v30 = vand.u32 4294901760, %v61_v63  ;;  %v1393_v34 = vand.u32 4294901760, %v988_v61  ;;  %v1017_v35 = vsub.f32 %v36_v53, %v990_v62  ;;  %v1019_v36 = vand.u32 4294901760, %v32_v6 }
  0x17   :  { %134 = vmatpush.msra.mxu1 %v133_v49  ;;  %232 = vmatpush.msra.mxu2 %v922_v27  ;;  %1423 = vst [vmem:[#allocation9_spill] sm:$0xff] %v1004_v12  ;;  %v157_v38 = vand.u32 4294901760, %v156_v1  ;;  %v168_v40 = vsub.f32 %v971_v52, %v1392_v2  ;;  %v1026_v43 = vsub.f32 %v63_v60, %v1004_v12  ;;  %v1028_v44 = vand.u32 4294901760, %v59_v13 }
  0x18   :  { %85 = vmatpush.msra.mxu0 %v917_v24  ;;  %281 = vmatpush.msra.mxu3 %v917_v24  ;;  %1424 = vst [vmem:[#allocation10_spill] sm:$0xff] %v1019_v36  ;;  %v163_v48 = vand.u32 4294901760, %v162_v7  ;;  %v1033_v49 = vsub.f32 %v34_v59, %v1002_v8  ;;  %v174_v53 = vsub.f32 %v981_v57, %v1391_v28  ;;  %v1043_v60 = vand.u32 4294901760, %v57_v37 }
  0x19   :  { %140 = vmatpush.msra.mxu1 %v139_v55  ;;  %235 = vmatpush.msra.mxu2 %v946_v39  ;;  %v1398_v55 = vand.u32 4294901760, %v1009_v29  ;;  %v1041_v56 = vsub.f32 %v61_v63, %v1011_v30  ;;  %v180_v59 = vsub.f32 %v988_v61, %v1393_v34  ;;  %v1401_v1 = vand.u32 4294901760, %v1017_v35 }
  0x1a   :  { %87 = vmatpush.msra.mxu0 %v938_v33  ;;  %283 = vmatpush.msra.mxu3 %v938_v33  ;;  %v1052_v7 = vsub.f32 %v32_v6, %v1019_v36  ;;  %v169_v63 = vand.u32 4294901760, %v168_v40  ;;  %v1057_v28 = vsub.f32 %v59_v13, %v1028_v44  ;;  %v1059_v2 = vand.u32 4294901760, %v55_v50  ;;  %v51_v6 = vld [vmem:[#allocation2 + $0x98] sm:$0xff] }
  0x1b   :  { %146 = vmatpush.msra.mxu1 %v145_v0  ;;  %238 = vmatpush.msra.mxu2 %v951_v42  ;;  %1425 = vst [vmem:[#allocation11_spill] sm:$0xff] %v1041_v56  ;;  %v53_v0 = vld [vmem:[#allocation2 + $0xa8] sm:$0xff]  ;;  %v1407_v34 = vand.u32 4294901760, %v1033_v49  ;;  %v186_v13 = vsub.f32 %v1009_v29, %v1398_v55  ;;  %v1406_v40 = vand.u32 4294901760, %v1041_v56  ;;  %v1072_v51 = vsub.f32 %v57_v37, %v1043_v60 }
  0x1c   :  { %89 = vmatpush.msra.mxu0 %v957_v45  ;;  %285 = vmatpush.msra.mxu3 %v957_v45  ;;  %1426 = vst [vmem:[#allocation12_spill] sm:$0xff] %v1057_v28  ;;  %v1064_v54 = vand.u32 4294901760, %v53_v0  ;;  %v181_v41 = vand.u32 4294901760, %v180_v59  ;;  %v1412_v55 = vand.u32 4294901760, %v1057_v28  ;;  %v1086_v59 = vsub.f32 %v55_v50, %v1059_v2 }
  0x1d   :  { %152 = vmatpush.msra.mxu1 %v151_v25  ;;  %241 = vmatpush.msra.mxu2 %v971_v52  ;;  %v1402_v25 = vand.u32 4294901760, %v1026_v43  ;;  %1427 = vst [vmem:[#allocation13_spill] sm:$0xff] %v1072_v51  ;;  %v1088_v31 = vand.u32 4294901760, %v51_v6  ;;  %v461_v50 = vsub.f32 %v1041_v56, %v1406_v40  ;;  %v1103_v22 = vand.u32 4294901760, %v49_v32 }
  0x1e   :  { %91 = vmatpush.msra.mxu0 %v959_v46  ;;  %287 = vmatpush.msra.mxu3 %v959_v46 }
  0x1f   :  { %158 = vmatpush.msra.mxu1 %v157_v38  ;;  %244 = vmatpush.msra.mxu2 %v981_v57  ;;  %v175_v38 = vand.u32 4294901760, %v174_v53  ;;  %v1410_v53 = vand.u32 4294901760, %v1052_v7  ;;  %v455_v37 = vsub.f32 %v1026_v43, %v1402_v25  ;;  %v187_v25 = vand.u32 4294901760, %v186_v13  ;;  %v45_v13 = vld [vmem:[#allocation2 + $0x68] sm:$0xff] }
  0x20   :  { %93 = vmatpush.msra.mxu0 %v963_v47  ;;  %289 = vmatpush.msra.mxu3 %v963_v47  ;;  %v1128_v23 = vsub.f32 %v49_v32, %v1103_v22 }
  0x21   :  { %164 = vmatpush.msra.mxu1 %v163_v48  ;;  %247 = vmatpush.msra.mxu2 %v988_v61  ;;  %v192_v48 = vsub.f32 %v1017_v35, %v1401_v1  ;;  %v1096_v1 = vsub.f32 %v53_v0, %v1064_v54  ;;  %v204_v0 = vsub.f32 %v1052_v7, %v1410_v53  ;;  %v456_v40 = vand.u32 4294901760, %v455_v37 }
  0x22   :  { %95 = vmatpush.msra.mxu0 %v983_v58  ;;  %291 = vmatpush.msra.mxu3 %v983_v58  ;;  %v462_v37 = vand.u32 4294901760, %v461_v50 }
  0x23   :  { %170 = vmatpush.msra.mxu1 %v169_v63  ;;  %250 = vmatpush.msra.mxu2 %v1009_v29  ;;  %v198_v63 = vsub.f32 %v1033_v49, %v1407_v34  ;;  %v193_v21 = vand.u32 4294901760, %v192_v48  ;;  %v467_v34 = vsub.f32 %v1057_v28, %v1412_v55  ;;  %v1118_v48 = vsub.f32 %v51_v6, %v1088_v31  ;;  %v41_v28 = vld [vmem:[#allocation2 + $0x48] sm:$0xff] }
  0x24   :  { %97 = vmatpush.msra.mxu0 %v990_v62  ;;  %293 = vmatpush.msra.mxu3 %v990_v62  ;;  %v1130_v6 = vand.u32 4294901760, %v45_v13  ;;  %v205_v53 = vand.u32 4294901760, %v204_v0 }
  0x25   :  { %176 = vmatpush.msra.mxu1 %v175_v38  ;;  %253 = vmatpush.msra.mxu2 %v1017_v35  ;;  %v1110_v38 = vand.u32 4294901760, %v47_v26  ;;  %v199_v56 = vand.u32 4294901760, %v198_v63  ;;  %v1429_v63 = vand.u32 4294901760, %v891_v14  ;;  %v468_v50 = vand.u32 4294901760, %v467_v34 }
  0x26   :  { %99 = vmatpush.msra.mxu0 %v1002_v8  ;;  %295 = vmatpush.msra.mxu3 %v1002_v8  ;;  %v1428_v8 = vand.u32 4294901760, %v1072_v51  ;;  %v1431_v14 = vand.u32 4294901760, %v895_v15  ;;  %v1152_v0 = vsub.f32 %v45_v13, %v1130_v6 }
  0x27   :  { %182 = vmatpush.msra.mxu1 %v181_v41  ;;  %256 = vmatpush.msra.mxu2 %v1033_v49  ;;  %v43_v41 = vld [vmem:[#allocation2 + $0x58] sm:$0xff] }
  0x28   :  { %101 = vmatpush.msra.mxu0 %v1019_v36  ;;  %297 = vmatpush.msra.mxu3 %v1019_v36  ;;  %v473_v55 = vsub.f32 %v1072_v51, %v1428_v8  ;;  %v1430_v8 = vand.u32 4294901760, %v1086_v59  ;;  %v490_v51 = vand.u32 4294901760, %v1118_v48  ;;  %v1142_v36 = vand.u32 4294901760, %v43_v41 }
  0x29   :  { %188 = vmatpush.msra.mxu1 %v187_v25  ;;  %259 = vmatpush.msra.mxu2 %v1052_v7  ;;  %v1136_v25 = vsub.f32 %v47_v26, %v1110_v38  ;;  %v1432_v26 = vand.u32 4294901760, %v1096_v1 }
  0x2a   :  { %308 = vmatpush.msrb.mxu0 %v1429_v63  ;;  %457 = vmatpush.msrb.mxu3 %v456_v40  ;;  %v479_v32 = vsub.f32 %v1086_v59, %v1430_v8  ;;  %v474_v34 = vand.u32 4294901760, %v473_v55  ;;  %v1421_v40 = vand.u32 4294901760, %v1128_v23  ;;  %v1154_v63 = vand.u32 4294901760, %v41_v28 }
  0x2b   :  { %412 = vmatpush.msrb.mxu2 %v1004_v12  ;;  %194 = vmatpush.msra.mxu1 %v193_v21  ;;  %v39_v12 = vld [vmem:[#allocation2 + $0x38] sm:$0xff]  ;;  %v485_v21 = vsub.f32 %v1096_v1, %v1432_v26  ;;  %v1433_v8 = vand.u32 4294901760, %v899_v16  ;;  %v1420_v15 = vand.u32 4294901760, %v1136_v25  ;;  %v37_v26 = vld [vmem:[#allocation2 + $0x28] sm:$0xff]  ;;  %v1166_v13 = vsub.f32 %v43_v41, %v1142_v36 }
  0x2c   :  { %312 = vmatpush.msrb.mxu0 %v1431_v14  ;;  %463 = vmatpush.msrb.mxu3 %v462_v37  ;;  %v1160_v14 = vand.u32 4294901760, %v39_v12  ;;  %v480_v55 = vand.u32 4294901760, %v479_v32  ;;  %v35_v37 = vld [vmem:[#allocation2 + $0x18] sm:$0xff]  ;;  %v1177_v32 = vsub.f32 %v41_v28, %v1154_v63  ;;  %v1179_v41 = vand.u32 4294901760, %v37_v26 }
  0x2d   :  { %414 = vmatpush.msrb.mxu2 %v1011_v30  ;;  %200 = vmatpush.msra.mxu1 %v199_v56  ;;  %v491_v56 = vsub.f32 %v1118_v48, %v490_v51  ;;  %v486_v16 = vand.u32 4294901760, %v485_v21  ;;  %v1435_v21 = vand.u32 4294901760, %v907_v19  ;;  %v514_v28 = vand.u32 4294901760, %v1166_v13 }
  0x2e   :  { %316 = vmatpush.msrb.mxu0 %v1433_v8  ;;  %469 = vmatpush.msrb.mxu3 %v468_v50  ;;  %v1434_v8 = vand.u32 4294901760, %v904_v18  ;;  %v508_v50 = vand.u32 4294901760, %v1152_v0  ;;  %v1187_v18 = vsub.f32 %v39_v12, %v1160_v14  ;;  %v1436_v12 = vand.u32 4294901760, %v910_v20 }
  0x2f   :  { %416 = vmatpush.msrb.mxu2 %v1028_v44  ;;  %206 = vmatpush.msra.mxu1 %v205_v53  ;;  %v497_v53 = vsub.f32 %v1128_v23, %v1421_v40  ;;  %v1437_v20 = vand.u32 4294901760, %v922_v27 }
  0x30   :  { %320 = vmatpush.msrb.mxu0 %v1434_v8  ;;  %475 = vmatpush.msrb.mxu3 %v474_v34  ;;  %v492_v34 = vand.u32 4294901760, %v491_v56  ;;  %v1192_v8 = vand.u32 4294901760, %v35_v37  ;;  %v520_v56 = vand.u32 4294901760, %v1177_v32  ;;  %v526_v40 = vand.u32 4294901760, %v1187_v18 }
  0x31   :  { %375 = vmatpush.msrb.mxu1 %v878_v3  ;;  %418 = vmatpush.msrb.mxu2 %v1043_v60  ;;  %v503_v3 = vsub.f32 %v1136_v25, %v1420_v15  ;;  %v31_v15 = vld [vmem:[%s1387_s0] sm:$0xff]  ;;  %v498_v19 = vand.u32 4294901760, %v497_v53 }
  0x32   :  { %324 = vmatpush.msrb.mxu0 %v1435_v21  ;;  %481 = vmatpush.msrb.mxu3 %v480_v55  ;;  %v509_v55 = vsub.f32 %v1152_v0, %v508_v50 }
  0x33   :  { %377 = vmatpush.msrb.mxu1 %v880_v4  ;;  %420 = vmatpush.msrb.mxu2 %v1059_v2  ;;  %v33_v4 = vld [vmem:[#allocation2 + $0x8] sm:$0xff]  ;;  %v504_v21 = vand.u32 4294901760, %v503_v3  ;;  %v521_v3 = vsub.f32 %v1177_v32, %v520_v56 }
  0x34   :  { %328 = vmatpush.msrb.mxu0 %v1436_v12  ;;  %487 = vmatpush.msrb.mxu3 %v486_v16  ;;  %v515_v16 = vsub.f32 %v1166_v13, %v514_v28  ;;  %v1216_v53 = vand.u32 4294901760, %v33_v4  ;;  %v1221_v12 = vand.u32 4294901760, %v31_v15  ;;  %v510_v27 = vand.u32 4294901760, %v509_v55 }
  0x35   :  { %379 = vmatpush.msrb.mxu1 %v882_v5  ;;  %422 = vmatpush.msrb.mxu2 %v1064_v54  ;;  %v1206_v5 = vsub.f32 %v37_v26, %v1179_v41  ;;  %v1219_v26 = vsub.f32 %v35_v37, %v1192_v8  ;;  %v1439_v37 = vand.u32 4294901760, %v951_v42  ;;  %v522_v42 = vand.u32 4294901760, %v521_v3 }
  0x36   :  { %332 = vmatpush.msrb.mxu0 %v1437_v20  ;;  %493 = vmatpush.msrb.mxu3 %v492_v34  ;;  %v1240_v55 = vsub.f32 %v31_v15, %v1221_v12  ;;  %v1243_v20 = vsub.f32 %v33_v4, %v1216_v53  ;;  %v1441_v15 = vand.u32 4294901760, %v981_v57 }
  0x37   :  { %381 = vmatpush.msrb.mxu1 %v884_v9  ;;  %424 = vmatpush.msrb.mxu2 %v1088_v31  ;;  %v1438_v9 = vand.u32 4294901760, %v946_v39  ;;  %v532_v34 = vand.u32 4294901760, %v1206_v5  ;;  %v516_v39 = vand.u32 4294901760, %v515_v16 }
  0x38   :  { %499 = vmatpush.msrb.mxu3 %v498_v19  ;;  %v538_v19 = vand.u32 4294901760, %v1219_v26  ;;  %v544_v4 = vand.u32 4294901760, %v1243_v20  ;;  %v1261_v16 = vand.u32 4294901760, %v1240_v55  ;;  %262 = vmatmul.f32.vlgmr.msra.gmra.mxu2 %v1240_v55 }
  0x39   :  { %383 = vmatpush.msrb.mxu1 %v886_v10  ;;  %426 = vmatpush.msrb.mxu2 %v1103_v22  ;;  %v527_v10 = vsub.f32 %v1187_v18, %v526_v40 }
  0x3a   :  { %336 = vmatpush.msrb.mxu0 %v1438_v9  ;;  %505 = vmatpush.msrb.mxu3 %v504_v21  ;;  %v533_v21 = vsub.f32 %v1206_v5, %v532_v34  ;;  %v1443_v9 = vand.u32 4294901760, %v1009_v29  ;;  %v105_v3 = vsub.f32 %v1240_v55, %v1261_v16 }
  0x3b   :  { %385 = vmatpush.msrb.mxu1 %v888_v11  ;;  %428 = vmatpush.msrb.mxu2 %v1110_v38  ;;  %v1440_v11 = vand.u32 4294901760, %v971_v52  ;;  %v539_v52 = vsub.f32 %v1219_v26, %v538_v19 }
  0x3c   :  { %340 = vmatpush.msrb.mxu0 %v1439_v37  ;;  %511 = vmatpush.msrb.mxu3 %v510_v27  ;;  %v534_v57 = vand.u32 4294901760, %v533_v21  ;;  %v1451_v37 = vld [vmem:[#allocation9_spill] sm:$0xff] }
  0x3d   :  { %387 = vmatpush.msrb.mxu1 %v901_v17  ;;  %430 = vmatpush.msrb.mxu2 %v1130_v6  ;;  %v528_v17 = vand.u32 4294901760, %v527_v10  ;;  %v540_v27 = vand.u32 4294901760, %v539_v52  ;;  %v106_v10 = vand.u32 4294901760, %v105_v3 }
  0x3e   :  { %344 = vmatpush.msrb.mxu0 %v1440_v11  ;;  %517 = vmatpush.msrb.mxu3 %v516_v39 }
  0x3f   :  { %389 = vmatpush.msrb.mxu1 %v917_v24  ;;  %432 = vmatpush.msrb.mxu2 %v1142_v36  ;;  %v1442_v24 = vand.u32 4294901760, %v988_v61  ;;  %v1445_v61 = vand.u32 4294901760, %v1033_v49 }
  0x40   :  { %348 = vmatpush.msrb.mxu0 %v1441_v15  ;;  %523 = vmatpush.msrb.mxu3 %v522_v42  ;;  %v1457_v42 = vand.u32 4294901760, %v1086_v59 }
  0x41   :  { %391 = vmatpush.msrb.mxu1 %v938_v33  ;;  %434 = vmatpush.msrb.mxu2 %v1154_v63  ;;  %v545_v33 = vsub.f32 %v1243_v20, %v544_v4 }
  0x42   :  { %352 = vmatpush.msrb.mxu0 %v1442_v24  ;;  %529 = vmatpush.msrb.mxu3 %v528_v17 }
  0x43   :  { %393 = vmatpush.msrb.mxu1 %v957_v45  ;;  %436 = vmatpush.msrb.mxu2 %v1160_v14  ;;  %v1444_v45 = vand.u32 4294901760, %v1017_v35  ;;  %v546_v29 = vand.u32 4294901760, %v545_v33  ;;  %v1448_v35 = vld [vmem:[#allocation8_spill] sm:$0xff] }
  0x44   :  { %356 = vmatpush.msrb.mxu0 %v1443_v9  ;;  %535 = vmatpush.msrb.mxu3 %v534_v57 }
  0x45   :  { %395 = vmatpush.msrb.mxu1 %v959_v46  ;;  %438 = vmatpush.msrb.mxu2 %v1179_v41  ;;  %v1446_v46 = vand.u32 4294901760, %v1052_v7  ;;  %v1452_v7 = vld [vmem:[#allocation10_spill] sm:$0xff] }
  0x46   :  { %360 = vmatpush.msrb.mxu0 %v1444_v45  ;;  %541 = vmatpush.msrb.mxu3 %v540_v27 }
  0x47   :  { %397 = vmatpush.msrb.mxu1 %v963_v47  ;;  %440 = vmatpush.msrb.mxu2 %v1192_v8  ;;  %v1447_v47 = vand.u32 4294901760, %v1026_v43 }
  0x48   :  { %364 = vmatpush.msrb.mxu0 %v1445_v61  ;;  %547 = vmatpush.msrb.mxu3 %v546_v29 }
  0x49   :  { %399 = vmatpush.msrb.mxu1 %v983_v58  ;;  %442 = vmatpush.msrb.mxu2 %v1216_v53  ;;  %v1449_v58 = vld [vmem:[#allocation11_spill] sm:$0xff] }
  0x4a   :  { %368 = vmatpush.msrb.mxu0 %v1446_v46  ;;  %301 = vmatmul.f32.vlgmr.msra.gmra.mxu3 %v1261_v16  ;;  %v1450_v49 = vand.u32 4294901760, %v1449_v58 }
  0x4b   :  { %401 = vmatpush.msrb.mxu1 %v990_v62  ;;  %649 = vmatpush.msra.mxu2 %v1447_v47  ;;  %v1453_v62 = vld [vmem:[#allocation12_spill] sm:$0xff] }
  0x4c   :  { %107 = vmatmul.f32.vlgmr.msra.gmra.mxu0 %v106_v10  ;;  %716 = vmatpush.msra.mxu3 %v1451_v37  ;;  %v1454_v39 = vand.u32 4294901760, %v1453_v62 }
  0x4d   :  { %403 = vmatpush.msrb.mxu1 %v1448_v35  ;;  %555 = vmatpush.msra.mxu0 %v1026_v43  ;;  %v1455_v43 = vld [vmem:[#allocation13_spill] sm:$0xff] }
  0x4e   :  { %653 = vmatpush.msra.mxu2 %v1450_v49  ;;  %208 = vmatmul.f32.vlgmr.msra.gmra.mxu1 %v1221_v12  ;;  %v1456_v11 = vand.u32 4294901760, %v1455_v43 }
  0x4f   :  { %405 = vmatpush.msrb.mxu1 %v1452_v7  ;;  %558 = vmatpush.msra.mxu0 %v1449_v58 }
  0x50   :  { %657 = vmatpush.msra.mxu2 %v1454_v39  ;;  %718 = vmatpush.msra.mxu3 %v1011_v30 }
  0x51   :  { %608 = vmatpush.msra.mxu1 %v1451_v37  ;;  %561 = vmatpush.msra.mxu0 %v1453_v62 }
  0x52   :  { %661 = vmatpush.msra.mxu2 %v1456_v11  ;;  %720 = vmatpush.msra.mxu3 %v1028_v44 }
  0x53   :  { %610 = vmatpush.msra.mxu1 %v1011_v30  ;;  %564 = vmatpush.msra.mxu0 %v1455_v43  ;;  %v1458_v30 = vand.u32 4294901760, %v1096_v1 }
  0x54   :  { %665 = vmatpush.msra.mxu2 %v1457_v42  ;;  %722 = vmatpush.msra.mxu3 %v1043_v60 }
  0x55   :  { %612 = vmatpush.msra.mxu1 %v1028_v44  ;;  %370 = vmatmul.f32.vlgmr.msrb.gmra.mxu0 %v1221_v12  ;;  %v1459_v44 = vand.u32 4294901760, %v1128_v23 }
  0x56   :  { %567 = vmatpush.msra.mxu0 %v1086_v59  ;;  %669 = vmatpush.msra.mxu2 %v1458_v30 }
  0x57   :  { %614 = vmatpush.msra.mxu1 %v1043_v60  ;;  %724 = vmatpush.msra.mxu3 %v1059_v2 }
  0x58   :  { %407 = vmatmul.f32.vlgmr.msrb.gmra.mxu1 %v1221_v12  ;;  %570 = vmatpush.msra.mxu0 %v1096_v1 }
  0x59   :  { %616 = vmatpush.msra.mxu1 %v1059_v2  ;;  %673 = vmatpush.msra.mxu2 %v490_v51  ;;  %v1460_v2 = vand.u32 4294901760, %v1136_v25 }
  0x5a   :  { %726 = vmatpush.msra.mxu3 %v1064_v54  ;;  %573 = vmatpush.msra.mxu0 %v1118_v48 }
  0x5b   :  { %618 = vmatpush.msra.mxu1 %v1064_v54  ;;  %677 = vmatpush.msra.mxu2 %v1459_v44  ;;  %v64_v54 = vld [vmem:[%s1389_s2] sm:$0x3]  ;;  %s854_s2 = smov [#allocation5]  }
  0x5c   :  { %728 = vmatpush.msra.mxu3 %v1088_v31  ;;  %576 = vmatpush.msra.mxu0 %v1128_v23  ;;  %v67_v60 = vperm.slane %v64_v54, 1  ;;  %s778_s21 = sshll.u32 %s854_s2, 4  ;;  %s779_s21 = int_to_ptr.vmem [resolvable:$true] %s778_s21 }
  0x5d   :  { %620 = vmatpush.msra.mxu1 %v1088_v31  ;;  %681 = vmatpush.msra.mxu2 %v1460_v2 }
  0x5e   :  { %730 = vmatpush.msra.mxu3 %v1103_v22  ;;  %579 = vmatpush.msra.mxu0 %v1136_v25 }
  0x5f   :  { %622 = vmatpush.msra.mxu1 %v1103_v22  ;;  %685 = vmatpush.msra.mxu2 %v508_v50 }
  0x60   :  { %732 = vmatpush.msra.mxu3 %v1110_v38  ;;  %582 = vmatpush.msra.mxu0 %v1152_v0 }
  0x61   :  { %624 = vmatpush.msra.mxu1 %v1110_v38  ;;  %689 = vmatpush.msra.mxu2 %v514_v28 }
  0x62   :  { %734 = vmatpush.msra.mxu3 %v1130_v6  ;;  %585 = vmatpush.msra.mxu0 %v1166_v13 }
  0x63   :  { %626 = vmatpush.msra.mxu1 %v1130_v6  ;;  %693 = vmatpush.msra.mxu2 %v520_v56 }
  0x64   :  { %736 = vmatpush.msra.mxu3 %v1142_v36  ;;  %448 = vmatmul.f32.vlgmr.msrb.gmra.mxu2 %v106_v10 }
  0x65   :  { %588 = vmatpush.msra.mxu0 %v1177_v32  ;;  %628 = vmatpush.msra.mxu1 %v1142_v36 }
  0x66   :  { %697 = vmatpush.msra.mxu2 %v526_v40  ;;  %738 = vmatpush.msra.mxu3 %v1154_v63 }
  0x67   :  { %549 = vmatmul.f32.vlgmr.msrb.gmra.mxu3 %v1221_v12  ;;  %591 = vmatpush.msra.mxu0 %v1187_v18  ;;  %v66_v18 = vperm.slane %v64_v54, 0 }
  0x68   :  { %630 = vmatpush.msra.mxu1 %v1154_v63  ;;  %701 = vmatpush.msra.mxu2 %v532_v34 }
  0x69   :  { %740 = vmatpush.msra.mxu3 %v1160_v14  ;;  %594 = vmatpush.msra.mxu0 %v1206_v5 }
  0x6a   :  { %632 = vmatpush.msra.mxu1 %v1160_v14  ;;  %705 = vmatpush.msra.mxu2 %v538_v19 }
  0x6b   :  { %742 = vmatpush.msra.mxu3 %v1179_v41  ;;  %597 = vmatpush.msra.mxu0 %v1219_v26 }
  0x6c   :  { %634 = vmatpush.msra.mxu1 %v1179_v41  ;;  %709 = vmatpush.msra.mxu2 %v544_v4 }
  0x6d   :  { %744 = vmatpush.msra.mxu3 %v1192_v8  ;;  %711 = vmatmul.f32.vlgmr.msra.gmra.mxu2 %v1221_v12 }
  0x6e   :  { %600 = vmatpush.msra.mxu0 %v1243_v20  ;;  %636 = vmatpush.msra.mxu1 %v1192_v8 }
  0x6f   :  { %746 = vmatpush.msra.mxu3 %v1216_v53  ;;  %603 = vmatmul.f32.vlgmr.msra.gmra.mxu0 %v1240_v55 }
  0x70   :  { %748 = vmatmul.f32.vlgmr.msra.gmra.mxu3 %v1221_v12  ;;  %638 = vmatpush.msra.mxu1 %v1216_v53 }
  0x71   :  { %642 = vmatmul.f32.vlgmr.msra.gmra.mxu1 %v1261_v16 }
  0xbb   :  { %v263_v31 = vpop.f32.mrf.mxu2 }
  0xc9   :  { %v108_v22 = vpop.f32.mrf.mxu0 }
  0xca   :  { %v109_v28 = vadd.f32 %v108_v22, %v66_v18 }
  0xcb   :  { %v209_v23 = vpop.f32.mrf.mxu1 }
  0xcc   :  { %v210_v5 = vadd.f32 %v209_v23, %v109_v28 }
  0xcd   :  { %v302_v51 = vpop.f32.mrf.mxu3 }
  0xce   :  { %v264_v53 = vadd.f32 %v263_v31, %v210_v5 }
  0xd0   :  { %v303_v12 = vadd.f32 %v302_v51, %v264_v53 }
  0xd2   :  { %v371_v36 = vpop.f32.mrf.mxu0 }
  0xd3   :  { %v372_v20 = vadd.f32 %v371_v36, %v303_v12 }
  0xd5   :  { %v408_v1 = vpop.f32.mrf.mxu1 }
  0xd6   :  { %v409_v4 = vadd.f32 %v408_v1, %v372_v20 }
  0xe7   :  { %v449_v59 = vpop.f32.mrf.mxu2 }
  0xe8   :  { %v450_v38 = vadd.f32 %v449_v59, %v67_v60 }
  0xea   :  { %v550_v48 = vpop.f32.mrf.mxu3 }
  0xeb   :  { %v551_v6 = vadd.f32 %v550_v48, %v450_v38 }
  0xec   :  { %v604_v25 = vpop.f32.mrf.mxu0 }
  0xed   :  { %v605_v40 = vadd.f32 %v604_v25, %v551_v6 }
  0xee   :  { %v643_v0 = vpop.f32.mrf.mxu1 }
  0xef   :  { %v644_v63 = vadd.f32 %v643_v0, %v605_v40 }
  0xf0   :  { %v712_v14 = vpop.f32.mrf.mxu2 }
  0xf1   :  { %v713_v13 = vadd.f32 %v712_v14, %v644_v63 }
  0xf3   :  { %v749_v50 = vpop.f32.mrf.mxu3 }
  0xf4   :  { %v750_v32 = vadd.f32 %v749_v50, %v713_v13 }
  0xf6   :  { %v790_v41 = vmul.f32 -1.442695, %v750_v32 }
  0xf8   :  { %795 = vpow2.f32 %v790_v41 }
  0xfe   :  { %v796_v8 = vpop.eup %795 }
  0xff   :  { %v755_v56 = vadd.f32 1.0, %v796_v8 }
 0x101   :  { %797 = vrcp.f32 %v755_v56  ;;  %v767_v55 = vand.u32 2147483648, %v755_v56  ;;  %v765_v15 = vand.u32 2147483647, %v755_v56  ;;  %vm761_vm1 = vweird.f32 %v755_v56 }
 0x103   :  { %v768_v52 = vor.u32 1.1754944e-38, %v767_v55  ;;  %vm766_vm3 = vcmp.eq.f32.partialorder %v765_v15, 8.507059e+37 }
 0x107   :  { %v798_v26 = vpop.eup %797 }
 0x108   :  { %v757_v34 = vmul.f32 %v798_v26, %v755_v56  ;;  %vm762_vm0 = vweird.f32 %v798_v26 }
 0x109   :  { %vm763_vm2 = vmor %vm761_vm1, %vm762_vm0 }
 0x10a   :  { %v758_v19 = vsub.f32 1.0, %v757_v34 }
 0x10c   :  { %v759_v21 = vmul.f32 %v798_v26, %v758_v19 }
 0x10e   :  { %v760_v17 = vadd.f32 %v798_v26, %v759_v21 }
 0x110   :  { %v764_v16 = vsel %vm763_vm2, %v798_v26, %v760_v17 }
 0x111   :  { %v769_v24 = vsel %vm766_vm3, %v768_v52, %v764_v16 }
 0x112   :  { %v771_v57 = vmul.f32 %v769_v24, %v409_v4 }
 0x114   :  { %772 = vst [vmem:[#allocation5] sm:$0xff] %v771_v57 }
 0x115   :  { %783 = dma.vmem_to_hbm [thread:$0]  %s779_s21, 128, %s781_s24, [#allocation4]  }
 0x116   :  { %849 = dma.done.wait [#allocation4], 128  }
 0x117   :  { %850 = vsyncadd [#allocation4], 4294967168 }
 0x118   :  { %788 = vsyncpa [#allocation3], 1 }
 0x119   :  { %789 = vsyncpa [#allocation4], 1 }

</bundles_post_ra>
